<compile_context>
chip_gen: v6e
topology: v6e:2x2x1
jax: 0.10.0
libtpu: 0.0.40
codegen_flags: <defaults>
</compile_context>

<pallas_src>
import functools

import jax
import jax.numpy as jnp
from jax import lax
from jax.experimental import pallas as pl
from jax.experimental.pallas import tpu as pltpu


def _round_up(x, m):
    return ((x + m - 1) // m) * m


# --------------------------------------------------------------------------
# Kernels
# --------------------------------------------------------------------------
def _noisy_train_kernel(x_ref, ei_ref, wmu_ref, wsig_ref, eo_ref, b_ref,
                        o_ref, sig_acc_ref):
    """Training path: o = x @ Wmu_t + eps_out * ((x * eps_in) @ Wsig_t) + b.

    Wmu_t / Wsig_t are pre-transposed (in_p, out_p) tiles; accumulation is f32.
    """
    k = pl.program_id(2)

    @pl.when(k == 0)
    def _():
        o_ref[...] = jnp.zeros_like(o_ref)
        sig_acc_ref[...] = jnp.zeros_like(sig_acc_ref)

    x = x_ref[...]
    # mu path: accumulate straight into the resident f32 output block.
    o_ref[...] += jnp.dot(x, wmu_ref[...], preferred_element_type=jnp.float32)
    # sigma path: cheap lane-wise eps_in scale on x, then a second MXU matmul.
    xe = x * ei_ref[...]
    sig_acc_ref[...] += jnp.dot(xe, wsig_ref[...],
                                preferred_element_type=jnp.float32)

    @pl.when(k == pl.num_programs(2) - 1)
    def _():
        # eps_out is a lane-dense (1, tn) row; bias was pre-combined in the wrapper.
        o_ref[...] += sig_acc_ref[...] * eo_ref[...] + b_ref[...]


def _mu_linear_kernel(x_ref, wmu_ref, b_ref, o_ref):
    """Eval path: plain linear with mu parameters only (sigma/eps never touched)."""
    k = pl.program_id(2)

    @pl.when(k == 0)
    def _():
        o_ref[...] = jnp.zeros_like(o_ref)

    o_ref[...] += jnp.dot(x_ref[...], wmu_ref[...],
                          preferred_element_type=jnp.float32)

    @pl.when(k == pl.num_programs(2) - 1)
    def _():
        o_ref[...] += b_ref[...]


# --------------------------------------------------------------------------
# Builder: one-time padding / transpose / dtype-cast, returns a jitted forward
# --------------------------------------------------------------------------
def make_noisy_linear(weight_mu, weight_sigma, bias_mu, bias_sigma,
                      eps_in=None, eps_out=None, *, training=True,
                      param_dtype=jnp.bfloat16, tm_max=256, tn_max=512):
    """Returns fwd(x) -> (B, out_feat) f32, with padding/transpose done once here."""
    if training and (eps_in is None or eps_out is None):
        raise ValueError("training=True requires eps_in and eps_out.")

    out_feat, in_feat = weight_mu.shape
    itemsize = jnp.dtype(param_dtype).itemsize
    tk_max = 2048 if itemsize <= 2 else 1024   # keep double-buffered streams ~<=12 MiB

    in_128 = _round_up(in_feat, 128)
    out_128 = _round_up(out_feat, 128)
    tk = min(tk_max, in_128)
    tn = min(tn_max, out_128)
    # v7x has 2 TensorCores: expose >=2 tiles on the parallel j axis when possible.
    if out_128 // tn < 2 and out_128 >= 256:
        tn = max(128, ((out_128 // 2) // 128) * 128)

    in_p = _round_up(in_feat, tk)
    out_p = _round_up(out_feat, tn)

    def _pad_transpose(w):  # (out, in) f32 -> padded, transposed (in_p, out_p)
        wp = jnp.pad(w.astype(jnp.float32),
                     ((0, out_p - out_feat), (0, in_p - in_feat)))
        return wp.T.astype(param_dtype)

    wmu_t = _pad_transpose(weight_mu)

    if training:
        wsig_t = _pad_transpose(weight_sigma)
        ei_row = jnp.pad(eps_in.astype(param_dtype),
                         (0, in_p - in_feat)).reshape(1, in_p)
        eo_row = jnp.pad(eps_out.astype(jnp.float32),
                         (0, out_p - out_feat)).reshape(1, out_p)
        # Pre-combined bias: b = bias_mu + bias_sigma * eps_out (single (1, out_p) row).
        b_row = jnp.pad((bias_mu + bias_sigma * eps_out).astype(jnp.float32),
                        (0, out_p - out_feat)).reshape(1, out_p)
        params = (ei_row, wmu_t, wsig_t, eo_row, b_row)
    else:
        b_row = jnp.pad(bias_mu.astype(jnp.float32),
                        (0, out_p - out_feat)).reshape(1, out_p)
        params = (wmu_t, b_row)

    compiler_params = pltpu.CompilerParams(
        dimension_semantics=("parallel", "parallel", "arbitrary"),
        vmem_limit_bytes=48 * 1024 * 1024)

    w_spec = pl.BlockSpec((tk, tn), lambda i, j, k: (k, j))
    row_n_spec = pl.BlockSpec((1, tn), lambda i, j, k: (0, j))
    row_k_spec = pl.BlockSpec((1, tk), lambda i, j, k: (0, k))

    @jax.jit
    def fwd(x, params):
        B = x.shape[0]
        tm = min(tm_max, _round_up(B, 8))
        B_p = _round_up(B, tm)
        x_p = jnp.pad(x, ((0, B_p - B), (0, in_p - in_feat))).astype(param_dtype)

        grid = (B_p // tm, out_p // tn, in_p // tk)
        x_spec = pl.BlockSpec((tm, tk), lambda i, j, k: (i, k))
        out_spec = pl.BlockSpec((tm, tn), lambda i, j, k: (i, j))
        out_shape = jax.ShapeDtypeStruct((B_p, out_p), jnp.float32)

        if training:
            y_p = pl.pallas_call(
                _noisy_train_kernel,
                out_shape=out_shape,
                grid=grid,
                in_specs=[x_spec, row_k_spec, w_spec, w_spec,
                          row_n_spec, row_n_spec],
                out_specs=out_spec,
                scratch_shapes=[pltpu.VMEM((tm, tn), jnp.float32)],
                compiler_params=compiler_params,
            )(x_p, *params)
        else:
            y_p = pl.pallas_call(
                _mu_linear_kernel,
                out_shape=out_shape,
                grid=grid,
                in_specs=[x_spec, w_spec, row_n_spec],
                out_specs=out_spec,
                compiler_params=compiler_params,
            )(x_p, *params)

        return y_p[:B, :out_feat]

    return functools.partial(fwd, params=params)


# --------------------------------------------------------------------------
# Parameter / noise initialization (mirrors the PyTorch module; host/init-time)
# --------------------------------------------------------------------------
def _scale_noise(key, size):
    # torch: x = randn(size); return x.sign() * x.abs().sqrt()
    x = jax.random.normal(key, (size,), dtype=jnp.float32)
    return jnp.sign(x) * jnp.sqrt(jnp.abs(x))


def init_noisy_linear_params(key, in_feat, out_feat, sigma_init=0.5):
    k_wmu, k_bmu, k_ein, k_eout = jax.random.split(key, 4)
    mu_range = 1.0 / (in_feat ** 0.5)
    weight_mu = jax.random.uniform(k_wmu, (out_feat, in_feat),
                                   minval=-mu_range, maxval=mu_range,
                                   dtype=jnp.float32)
    bias_mu = jax.random.uniform(k_bmu, (out_feat,),
                                 minval=-mu_range, maxval=mu_range,
                                 dtype=jnp.float32)
    sigma_val = sigma_init / (in_feat ** 0.5)
    weight_sigma = jnp.full((out_feat, in_feat), sigma_val, dtype=jnp.float32)
    bias_sigma = jnp.full((out_feat,), sigma_val, dtype=jnp.float32)

    # Factored noise (weight_epsilon = outer(eps_out, eps_in); bias_epsilon = eps_out)
    eps_in = _scale_noise(k_ein, in_feat)
    eps_out = _scale_noise(k_eout, out_feat)
    return dict(weight_mu=weight_mu, weight_sigma=weight_sigma,
                bias_mu=bias_mu, bias_sigma=bias_sigma,
                eps_in=eps_in, eps_out=eps_out)


if __name__ == "__main__":
    key = jax.random.PRNGKey(0)
    k_params, k_x = jax.random.split(key)

    B, in_feat, out_feat = 8, 32, 64
    params = init_noisy_linear_params(k_params, in_feat, out_feat, sigma_init=0.5)
    x = jax.random.normal(k_x, (B, in_feat), dtype=jnp.float32)

    # Pure-JAX f32 reference (dense epsilon, as the PyTorch module stores it).
    w_eps = jnp.outer(params["eps_out"], params["eps_in"])
    w_ref = params["weight_mu"] + params["weight_sigma"] * w_eps
    b_ref = params["bias_mu"] + params["bias_sigma"] * params["eps_out"]
    y_ref = jnp.matmul(x, w_ref.T, precision=lax.Precision.HIGHEST) + b_ref

    # 1) f32 streaming path: matches the PyTorch f32 module tightly.
    fwd_f32 = make_noisy_linear(params["weight_mu"], params["weight_sigma"],
                                params["bias_mu"], params["bias_sigma"],
                                params["eps_in"], params["eps_out"],
                                training=True, param_dtype=jnp.float32)
    y_f32 = jax.block_until_ready(fwd_f32(x))
    assert y_f32.shape == (B, out_feat)
    assert jnp.allclose(y_f32, y_ref, atol=1e-4, rtol=1e-4)

    # 2) Default perf path: bf16 weight/x streaming with f32 MXU accumulation.
    #    (bf16 streaming halves HBM weight traffic; tolerance is correspondingly looser.)
    fwd_bf16 = make_noisy_linear(params["weight_mu"], params["weight_sigma"],
                                 params["bias_mu"], params["bias_sigma"],
                                 params["eps_in"], params["eps_out"],
                                 training=True, param_dtype=jnp.bfloat16)
    y_bf16 = jax.block_until_ready(fwd_bf16(x))
    assert y_bf16.shape == (B, out_feat)
    assert jnp.allclose(y_bf16, y_ref, atol=3e-2, rtol=3e-2)

    # 3) Eval path (mu-only kernel; sigma/epsilon never read).
    fwd_eval = make_noisy_linear(params["weight_mu"], params["weight_sigma"],
                                 params["bias_mu"], params["bias_sigma"],
                                 training=False, param_dtype=jnp.float32)
    y_eval = jax.block_until_ready(fwd_eval(x))
    y_eval_ref = jnp.matmul(x, params["weight_mu"].T,
                            precision=lax.Precision.HIGHEST) + params["bias_mu"]
    assert jnp.allclose(y_eval, y_eval_ref, atol=1e-4, rtol=1e-4)

    print("KERNEL_OK")
</pallas_src>

<mosaic_0001>
module attributes {stable_mosaic.version = 11 : i64} {
  func.func @_noisy_train_kernel(%arg0: i32, %arg1: i32, %arg2: i32, %arg3: memref<8x128xf32, #tpu.memory_space<vmem>>, %arg4: memref<1x128xf32, #tpu.memory_space<vmem>>, %arg5: memref<128x128xf32, #tpu.memory_space<vmem>>, %arg6: memref<128x128xf32, #tpu.memory_space<vmem>>, %arg7: memref<1x128xf32, #tpu.memory_space<vmem>>, %arg8: memref<1x128xf32, #tpu.memory_space<vmem>>, %arg9: memref<8x128xf32, #tpu.memory_space<vmem>>, %arg10: memref<8x128xf32, #tpu.memory_space<vmem>>) attributes {dimension_semantics = [#tpu.dimension_semantics<parallel>, #tpu.dimension_semantics<parallel>, #tpu.dimension_semantics<arbitrary>], iteration_bounds = array<i64: 1, 1, 1>, scalar_prefetch = 0 : i64, scratch_operands = 1 : i64, tpu.core_type = #tpu.core_type<tc>, window_params = [{transform_indices = @transform_0, window_bounds = array<i64: 8, 128>}, {transform_indices = @transform_1, window_bounds = array<i64: 1, 128>}, {transform_indices = @transform_2, window_bounds = array<i64: 128, 128>}, {transform_indices = @transform_3, window_bounds = array<i64: 128, 128>}, {transform_indices = @transform_4, window_bounds = array<i64: 1, 128>}, {transform_indices = @transform_5, window_bounds = array<i64: 1, 128>}, {transform_indices = @transform_6, window_bounds = array<i64: 8, 128>}]} {
    %c0_i32 = arith.constant 0 : i32
    %0 = arith.cmpi eq, %arg2, %c0_i32 : i32
    %1 = arith.extui %0 : i1 to i32
    %c0_i32_0 = arith.constant 0 : i32
    %2 = arith.cmpi ne, %1, %c0_i32_0 : i32
    scf.if %2 {
      %cst_19 = arith.constant 0.000000e+00 : f32
      %20 = vector.broadcast %cst_19 : f32 to vector<8x128xf32>
      %c0_20 = arith.constant 0 : index
      %c0_21 = arith.constant 0 : index
      %21 = vector.load %arg9[%c0_20, %c0_21] : memref<8x128xf32, #tpu.memory_space<vmem>>, vector<8x128xf32>
      tpu.vector_store %arg9[%c0_20, %c0_21], %20 {strides = array<i32>} : memref<8x128xf32, #tpu.memory_space<vmem>>, vector<8x128xf32>,
      %cst_22 = arith.constant 0.000000e+00 : f32
      %22 = vector.broadcast %cst_22 : f32 to vector<8x128xf32>
      %c0_23 = arith.constant 0 : index
      %c0_24 = arith.constant 0 : index
      %23 = vector.load %arg10[%c0_23, %c0_24] : memref<8x128xf32, #tpu.memory_space<vmem>>, vector<8x128xf32>
      tpu.vector_store %arg10[%c0_23, %c0_24], %22 {strides = array<i32>} : memref<8x128xf32, #tpu.memory_space<vmem>>, vector<8x128xf32>,
    } else {
    }
    %c0 = arith.constant 0 : index
    %c0_1 = arith.constant 0 : index
    %3 = vector.load %arg3[%c0, %c0_1] : memref<8x128xf32, #tpu.memory_space<vmem>>, vector<8x128xf32>
    %c0_2 = arith.constant 0 : index
    %c0_3 = arith.constant 0 : index
    %4 = vector.load %arg9[%c0_2, %c0_3] : memref<8x128xf32, #tpu.memory_space<vmem>>, vector<8x128xf32>
    %c0_4 = arith.constant 0 : index
    %c0_5 = arith.constant 0 : index
    %5 = vector.load %arg5[%c0_4, %c0_5] : memref<128x128xf32, #tpu.memory_space<vmem>>, vector<128x128xf32>
    %cst = arith.constant dense<0.000000e+00> : vector<8x128xf32>
    %6 = tpu.matmul %3, %5, %cst {dimension_numbers = #tpu.dot_dimension_numbers<[1], [0], [0], [1], [0, 0, 1, 1], [], []>} : vector<8x128xf32>, vector<128x128xf32>, vector<8x128xf32> -> vector<8x128xf32>
    %7 = arith.addf %4, %6 : vector<8x128xf32>
    %c0_6 = arith.constant 0 : index
    %c0_7 = arith.constant 0 : index
    %8 = vector.load %arg9[%c0_6, %c0_7] : memref<8x128xf32, #tpu.memory_space<vmem>>, vector<8x128xf32>
    tpu.vector_store %arg9[%c0_6, %c0_7], %7 {strides = array<i32>} : memref<8x128xf32, #tpu.memory_space<vmem>>, vector<8x128xf32>,
    %c0_8 = arith.constant 0 : index
    %c0_9 = arith.constant 0 : index
    %9 = vector.load %arg4[%c0_8, %c0_9] : memref<1x128xf32, #tpu.memory_space<vmem>>, vector<1x128xf32>
    %10 = vector.broadcast %9 : vector<1x128xf32> to vector<8x128xf32>
    %11 = arith.mulf %3, %10 : vector<8x128xf32>
    %c0_10 = arith.constant 0 : index
    %c0_11 = arith.constant 0 : index
    %12 = vector.load %arg10[%c0_10, %c0_11] : memref<8x128xf32, #tpu.memory_space<vmem>>, vector<8x128xf32>
    %c0_12 = arith.constant 0 : index
    %c0_13 = arith.constant 0 : index
    %13 = vector.load %arg6[%c0_12, %c0_13] : memref<128x128xf32, #tpu.memory_space<vmem>>, vector<128x128xf32>
    %cst_14 = arith.constant dense<0.000000e+00> : vector<8x128xf32>
    %14 = tpu.matmul %11, %13, %cst_14 {dimension_numbers = #tpu.dot_dimension_numbers<[1], [0], [0], [1], [0, 0, 1, 1], [], []>} : vector<8x128xf32>, vector<128x128xf32>, vector<8x128xf32> -> vector<8x128xf32>
    %15 = arith.addf %12, %14 : vector<8x128xf32>
    %c0_15 = arith.constant 0 : index
    %c0_16 = arith.constant 0 : index
    %16 = vector.load %arg10[%c0_15, %c0_16] : memref<8x128xf32, #tpu.memory_space<vmem>>, vector<8x128xf32>
    tpu.vector_store %arg10[%c0_15, %c0_16], %15 {strides = array<i32>} : memref<8x128xf32, #tpu.memory_space<vmem>>, vector<8x128xf32>,
    %c0_i32_17 = arith.constant 0 : i32
    %17 = arith.cmpi eq, %arg2, %c0_i32_17 : i32
    %18 = arith.extui %17 : i1 to i32
    %c0_i32_18 = arith.constant 0 : i32
    %19 = arith.cmpi ne, %18, %c0_i32_18 : i32
    scf.if %19 {
      %c0_19 = arith.constant 0 : index
      %c0_20 = arith.constant 0 : index
      %20 = vector.load %arg9[%c0_19, %c0_20] : memref<8x128xf32, #tpu.memory_space<vmem>>, vector<8x128xf32>
      %c0_21 = arith.constant 0 : index
      %c0_22 = arith.constant 0 : index
      %21 = vector.load %arg10[%c0_21, %c0_22] : memref<8x128xf32, #tpu.memory_space<vmem>>, vector<8x128xf32>
      %c0_23 = arith.constant 0 : index
      %c0_24 = arith.constant 0 : index
      %22 = vector.load %arg7[%c0_23, %c0_24] : memref<1x128xf32, #tpu.memory_space<vmem>>, vector<1x128xf32>
      %23 = vector.broadcast %22 : vector<1x128xf32> to vector<8x128xf32>
      %24 = arith.mulf %21, %23 : vector<8x128xf32>
      %c0_25 = arith.constant 0 : index
      %c0_26 = arith.constant 0 : index
      %25 = vector.load %arg8[%c0_25, %c0_26] : memref<1x128xf32, #tpu.memory_space<vmem>>, vector<1x128xf32>
      %26 = vector.broadcast %25 : vector<1x128xf32> to vector<8x128xf32>
      %27 = arith.addf %24, %26 : vector<8x128xf32>
      %28 = arith.addf %20, %27 : vector<8x128xf32>
      %c0_27 = arith.constant 0 : index
      %c0_28 = arith.constant 0 : index
      %29 = vector.load %arg9[%c0_27, %c0_28] : memref<8x128xf32, #tpu.memory_space<vmem>>, vector<8x128xf32>
      tpu.vector_store %arg9[%c0_27, %c0_28], %28 {strides = array<i32>} : memref<8x128xf32, #tpu.memory_space<vmem>>, vector<8x128xf32>,
    } else {
    }
    return
  }
  func.func @transform_0(%arg0: i32, %arg1: i32, %arg2: i32) -> (i32, i32) {
    %c0_i32 = arith.constant 0 : i32
    return %arg0, %arg2 : i32, i32
  }
  func.func @transform_1(%arg0: i32, %arg1: i32, %arg2: i32) -> (i32, i32) {
    %c0_i32 = arith.constant 0 : i32
    %c0_i32_0 = arith.constant 0 : i32
    return %c0_i32, %arg2 : i32, i32
  }
  func.func @transform_2(%arg0: i32, %arg1: i32, %arg2: i32) -> (i32, i32) {
    %c0_i32 = arith.constant 0 : i32
    return %arg2, %arg1 : i32, i32
  }
  func.func @transform_3(%arg0: i32, %arg1: i32, %arg2: i32) -> (i32, i32) {
    %c0_i32 = arith.constant 0 : i32
    return %arg2, %arg1 : i32, i32
  }
  func.func @transform_4(%arg0: i32, %arg1: i32, %arg2: i32) -> (i32, i32) {
    %c0_i32 = arith.constant 0 : i32
    %c0_i32_0 = arith.constant 0 : i32
    return %c0_i32, %arg1 : i32, i32
  }
  func.func @transform_5(%arg0: i32, %arg1: i32, %arg2: i32) -> (i32, i32) {
    %c0_i32 = arith.constant 0 : i32
    %c0_i32_0 = arith.constant 0 : i32
    return %c0_i32, %arg1 : i32, i32
  }
  func.func @transform_6(%arg0: i32, %arg1: i32, %arg2: i32) -> (i32, i32) {
    %c0_i32 = arith.constant 0 : i32
    return %arg0, %arg1 : i32, i32
  }
}

</mosaic_0001>

<bundles_post_ra>
// kernel: fwd.1
= control target key start
LH: loop header
LB: loop body
LE: loop exit
PB: predicated region body
PF: predicated region fallthrough
CT: control target
= control target key end

     0   :  { %11 = vsyncpa [#allocation4], 0  ;;  %s561_s0 = inlined_call_operand.vmem [shape: f32[8,128], index: 0, kind: input, shape index: {}]   ;;  %s562_s1 = inlined_call_operand.vmem [shape: f32[1,128], index: 1, kind: input, shape index: {}]   ;;  %s563_s2 = inlined_call_operand.hbm [shape: f32[128,128], index: 2, kind: input, shape index: {}]   ;;  %s564_s3 = inlined_call_operand.hbm [shape: f32[128,128], index: 3, kind: input, shape index: {}]   ;;  %s565_s4 = inlined_call_operand.vmem [shape: f32[1,128], index: 4, kind: input, shape index: {}]   ;;  %s566_s5 = inlined_call_operand.vmem [shape: f32[1,128], index: 5, kind: input, shape index: {}]   ;;  %s567_s6 = inlined_call_operand.hbm [shape: f32[8,128], index: 6, kind: output, shape index: {}]  }
   0x1   :  { %12 = vsyncpa [#allocation7], 0 }
   0x2   :  { %13 = vsyncpa [#allocation5], 0  ;;  %s464_s21 = smov [#allocation3]  }
   0x3   :  { %s23_s22 = sshll.u32 %s464_s21, 4  ;;  %s24_s22 = int_to_ptr.vmem [resolvable:$true] %s23_s22 }
   0x4   :  { %s406_s23 = scalar_lea.vmem %s24_s22, 2048  ;;  %p411_p1 = scmp.lt.s32.totalorder %s24_s22, %s24_s22 }
   0x5   :  { %p407_p0 = scmp.ne.s32.totalorder %s24_s22, %s406_s23  ;;  %p412_p2 = scmp.lt.s32.totalorder %s406_s23, %s406_s23 }
   0x7   :  { %p413_p3 = por %p412_p2, %p411_p1 }
   0x9   :  { %p414_p4 = pnand %p413_p3, %p407_p0 }
   0xb   :  { %417 = shalt.err (!%p414_p4)
}
   0xc   :  { %s465_s24 = smov 128   ;;  %s466_s25 = smov 8  }
   0xd   :  { %29 = dma.hbm_to_vmem [thread:$0]  %s563_s2, 2048, %s24_s22, [#allocation4], %s465_s24, %s465_s24, %s466_s25  }
   0xe   :  { %s467_s28 = smov [#allocation6]  }
   0xf   :  { %s35_s29 = sshll.u32 %s467_s28, 4  ;;  %s36_s29 = int_to_ptr.vmem [resolvable:$true] %s35_s29 }
  0x10   :  { %s426_s30 = scalar_lea.vmem %s36_s29, 2048  ;;  %p431_p6 = scmp.lt.s32.totalorder %s36_s29, %s36_s29 }
  0x11   :  { %p427_p5 = scmp.ne.s32.totalorder %s36_s29, %s426_s30  ;;  %p432_p7 = scmp.lt.s32.totalorder %s426_s30, %s426_s30 }
  0x13   :  { %p433_p8 = por %p432_p7, %p431_p6 }
  0x15   :  { %p434_p9 = pnand %p433_p8, %p427_p5 }
  0x17   :  { %437 = shalt.err (!%p434_p9)
}
  0x18   :  { %41 = dma.hbm_to_vmem [thread:$0]  %s564_s3, 2048, %s36_s29, [#allocation7], %s465_s24, %s465_s24, %s466_s25  }
  0x19   :  { %458 = dma.done.wait [#allocation4], 2048  }
  0x1a   :  { %459 = vsyncadd [#allocation4], 4294965248 }
  0x1b   :  { %460 = dma.done.wait [#allocation7], 2048  }
  0x1c   :  { %461 = vsyncadd [#allocation7], 4294965248  ;;  %v468_v0 = vmov 0.0   ;;  %vm469_vm0 = vmmov 0   ;;  %v75_v1 = vld [vmem:[#allocation3 + $0x78] sm:$0xff]  ;;  %v74_v2 = vld [vmem:[#allocation3 + $0x70] sm:$0xff] }
  0x1d   :  { %321 = vmatprep.subr.mxu0 %v468_v0  ;;  %356 = vmatprep.subr.mxu1 %v468_v0  ;;  %v172_v3 = vld [vmem:[#allocation6 + $0x78] sm:$0xff]  ;;  %v171_v4 = vld [vmem:[#allocation6 + $0x70] sm:$0xff]  ;;  %v73_v5 = vld [vmem:[#allocation3 + $0x68] sm:$0xff]  ;;  %s470_s13 = smov [#allocation8]  }
  0x1e   :  { %353 = vmatprep.mubr.msk.f32.mxu0 %vm469_vm0, %v468_v0  ;;  %388 = vmatprep.mubr.msk.f32.mxu1 %vm469_vm0, %v468_v0  ;;  %v170_v6 = vld [vmem:[#allocation6 + $0x68] sm:$0xff]  ;;  %v72_v7 = vld [vmem:[#allocation3 + $0x60] sm:$0xff]  ;;  %v71_v9 = vld [vmem:[#allocation3 + $0x58] sm:$0xff]  ;;  %s274_s14 = sshll.u32 %s470_s13, 4  ;;  %s275_s14 = int_to_ptr.vmem [resolvable:$true] %s274_s14 }
  0x1f   :  { %322 = vmatpush3.msra.mxu0 %v75_v1  ;;  %357 = vmatpush3.msra.mxu1 %v172_v3  ;;  %v169_v8 = vld [vmem:[#allocation6 + $0x60] sm:$0xff]  ;;  %v168_v10 = vld [vmem:[#allocation6 + $0x58] sm:$0xff]  ;;  %v70_v11 = vld [vmem:[#allocation3 + $0x50] sm:$0xff]  ;;  %s438_s15 = scalar_lea.vmem %s275_s14, 128  ;;  %p443_p11 = scmp.lt.s32.totalorder %s275_s14, %s275_s14 }
  0x20   :  { %323 = vmatprep.subr.mxu0 %v468_v0  ;;  %358 = vmatprep.subr.mxu1 %v468_v0  ;;  %v167_v12 = vld [vmem:[#allocation6 + $0x50] sm:$0xff]  ;;  %v69_v13 = vld [vmem:[#allocation3 + $0x48] sm:$0xff]  ;;  %v68_v15 = vld [vmem:[#allocation3 + $0x40] sm:$0xff]  ;;  %p439_p10 = scmp.ne.s32.totalorder %s275_s14, %s438_s15  ;;  %p444_p12 = scmp.lt.s32.totalorder %s438_s15, %s438_s15 }
  0x21   :  { %324 = vmatpush3.msra.mxu0 %v74_v2  ;;  %359 = vmatpush3.msra.mxu1 %v171_v4  ;;  %v166_v14 = vld [vmem:[#allocation6 + $0x48] sm:$0xff]  ;;  %v165_v16 = vld [vmem:[#allocation6 + $0x40] sm:$0xff]  ;;  %v67_v17 = vld [vmem:[#allocation3 + $0x38] sm:$0xff] }
  0x22   :  { %325 = vmatprep.subr.mxu0 %v468_v0  ;;  %360 = vmatprep.subr.mxu1 %v468_v0  ;;  %v164_v18 = vld [vmem:[#allocation6 + $0x38] sm:$0xff]  ;;  %v66_v19 = vld [vmem:[#allocation3 + $0x30] sm:$0xff]  ;;  %v65_v21 = vld [vmem:[#allocation3 + $0x28] sm:$0xff]  ;;  %p445_p13 = por %p444_p12, %p443_p11 }
  0x23   :  { %326 = vmatpush3.msra.mxu0 %v73_v5  ;;  %361 = vmatpush3.msra.mxu1 %v170_v6  ;;  %v163_v20 = vld [vmem:[#allocation6 + $0x30] sm:$0xff]  ;;  %v162_v22 = vld [vmem:[#allocation6 + $0x28] sm:$0xff]  ;;  %v64_v23 = vld [vmem:[#allocation3 + $0x20] sm:$0xff] }
  0x24   :  { %327 = vmatprep.subr.mxu0 %v468_v0  ;;  %362 = vmatprep.subr.mxu1 %v468_v0  ;;  %v161_v24 = vld [vmem:[#allocation6 + $0x20] sm:$0xff]  ;;  %v63_v25 = vld [vmem:[#allocation3 + $0x18] sm:$0xff]  ;;  %v62_v27 = vld [vmem:[#allocation3 + $0x10] sm:$0xff]  ;;  %p446_p0 = pnand %p445_p13, %p439_p10 }
  0x25   :  { %328 = vmatpush3.msra.mxu0 %v72_v7  ;;  %363 = vmatpush3.msra.mxu1 %v169_v8  ;;  %v160_v26 = vld [vmem:[#allocation6 + $0x18] sm:$0xff]  ;;  %v159_v28 = vld [vmem:[#allocation6 + $0x10] sm:$0xff]  ;;  %v61_v29 = vld [vmem:[#allocation3 + $0x8] sm:$0xff] }
  0x26   :  { %329 = vmatprep.subr.mxu0 %v468_v0  ;;  %364 = vmatprep.subr.mxu1 %v468_v0  ;;  %v58_v30 = vld [vmem:[%s561_s0] sm:$0xff]  ;;  %v158_v32 = vld [vmem:[#allocation6 + $0x8] sm:$0xff] }
  0x27   :  { %330 = vmatpush3.msra.mxu0 %v71_v9  ;;  %365 = vmatpush3.msra.mxu1 %v168_v10  ;;  %v284_v31 = vld [vmem:[%s562_s1] ss:$0 sm:$0xff] }
  0x28   :  { %331 = vmatprep.subr.mxu0 %v468_v0  ;;  %366 = vmatprep.subr.mxu1 %v468_v0  ;;  %v60_v33 = vld [vmem:[#allocation3] sm:$0xff]  ;;  %v155_v34 = vmul.f32 %v284_v31, %v58_v30 }
  0x29   :  { %332 = vmatpush3.msra.mxu0 %v70_v11  ;;  %367 = vmatpush3.msra.mxu1 %v167_v12  ;;  %v157_v35 = vld [vmem:[#allocation6] sm:$0xff] }
  0x2a   :  { %333 = vmatprep.subr.mxu0 %v468_v0  ;;  %368 = vmatprep.subr.mxu1 %v468_v0  ;;  %v285_v36 = vld [vmem:[%s565_s4] ss:$0 sm:$0xff] }
  0x2b   :  { %334 = vmatpush3.msra.mxu0 %v69_v13  ;;  %369 = vmatpush3.msra.mxu1 %v166_v14  ;;  %v286_v39 = vld [vmem:[%s566_s5] ss:$0 sm:$0xff] }
  0x2c   :  { %335 = vmatprep.subr.mxu0 %v468_v0  ;;  %370 = vmatprep.subr.mxu1 %v468_v0 }
  0x2d   :  { %336 = vmatpush3.msra.mxu0 %v68_v15  ;;  %371 = vmatpush3.msra.mxu1 %v165_v16 }
  0x2e   :  { %337 = vmatprep.subr.mxu0 %v468_v0  ;;  %372 = vmatprep.subr.mxu1 %v468_v0 }
  0x2f   :  { %338 = vmatpush3.msra.mxu0 %v67_v17  ;;  %373 = vmatpush3.msra.mxu1 %v164_v18 }
  0x30   :  { %339 = vmatprep.subr.mxu0 %v468_v0  ;;  %374 = vmatprep.subr.mxu1 %v468_v0 }
  0x31   :  { %340 = vmatpush3.msra.mxu0 %v66_v19  ;;  %375 = vmatpush3.msra.mxu1 %v163_v20 }
  0x32   :  { %341 = vmatprep.subr.mxu0 %v468_v0  ;;  %376 = vmatprep.subr.mxu1 %v468_v0 }
  0x33   :  { %342 = vmatpush3.msra.mxu0 %v65_v21  ;;  %377 = vmatpush3.msra.mxu1 %v162_v22 }
  0x34   :  { %343 = vmatprep.subr.mxu0 %v468_v0  ;;  %378 = vmatprep.subr.mxu1 %v468_v0 }
  0x35   :  { %344 = vmatpush3.msra.mxu0 %v64_v23  ;;  %379 = vmatpush3.msra.mxu1 %v161_v24 }
  0x36   :  { %345 = vmatprep.subr.mxu0 %v468_v0  ;;  %380 = vmatprep.subr.mxu1 %v468_v0 }
  0x37   :  { %346 = vmatpush3.msra.mxu0 %v63_v25  ;;  %381 = vmatpush3.msra.mxu1 %v160_v26 }
  0x38   :  { %347 = vmatprep.subr.mxu0 %v468_v0  ;;  %382 = vmatprep.subr.mxu1 %v468_v0 }
  0x39   :  { %348 = vmatpush3.msra.mxu0 %v62_v27  ;;  %383 = vmatpush3.msra.mxu1 %v159_v28 }
  0x3a   :  { %349 = vmatprep.subr.mxu0 %v468_v0  ;;  %384 = vmatprep.subr.mxu1 %v468_v0 }
  0x3b   :  { %350 = vmatpush3.msra.mxu0 %v61_v29  ;;  %385 = vmatpush3.msra.mxu1 %v158_v32 }
  0x3c   :  { %351 = vmatprep.subr.mxu0 %v468_v0  ;;  %386 = vmatprep.subr.mxu1 %v468_v0 }
  0x3d   :  { %352 = vmatpush3.msra.mxu0 %v60_v33  ;;  %387 = vmatpush3.msra.mxu1 %v157_v35 }
  0x3e   :  { %354 = vmatmul.mubr.f32.vlgmr.msra.gmra.mxu0 %v58_v30  ;;  %389 = vmatmul.mubr.f32.vlgmr.msra.gmra.mxu1 %v155_v34 }
  0xfe   :  { %v142_v37 = vpop.f32.mrf.mxu0  ;;  %v239_v38 = vpop.f32.mrf.mxu1 }
  0xff   :  { %v257_v41 = vmul.f32 %v285_v36, %v239_v38 }
 0x100   :  { %v355_v40 = vpop.f32.mrf.mxu0  ;;  %v390_v42 = vpop.f32.mrf.mxu1 }
 0x101   :  { %v265_v43 = vadd.f32 %v286_v39, %v257_v41 }
 0x103   :  { %v266_v44 = vadd.f32 %v265_v43, %v142_v37 }
 0x105   :  { %267 = vst [vmem:[#allocation8] sm:$0xff] %v266_v44 }
 0x106   :  { %449 = shalt.err (!%p446_p0)
}
 0x107   :  { %277 = dma.vmem_to_hbm [thread:$0]  %s275_s14, 128, %s567_s6, [#allocation5]  }
 0x108   :  { %462 = dma.done.wait [#allocation5], 128  }
 0x109   :  { %463 = vsyncadd [#allocation5], 4294967168 }
 0x10a   :  { %281 = vsyncpa [#allocation4], 1 }
 0x10b   :  { %282 = vsyncpa [#allocation7], 1 }
 0x10c   :  { %283 = vsyncpa [#allocation5], 1 }

</bundles_post_ra>
